<compile_context>
chip_gen: v5e
topology: v5e:2x2
jax: 0.10.0
libtpu: 0.0.40
codegen_flags: <defaults>
</compile_context>

<pallas_src>
import jax
import jax.numpy as jnp
from jax.experimental import pallas as pl
from jax.experimental.pallas import tpu as pltpu


# ---------------------------------------------------------------------------
# Pallas kernel: pointwise (1x1) conv MLP + max-pool over nsample + bias + ReLU
# ---------------------------------------------------------------------------
def _mlp_pool_kernel(x_ref, w_ref, b_ref, o_ref):
    # x_ref: (S, C_k, tn) bf16 | w_ref: (C_out, C_k) bf16 | b_ref: (C_out, 1) f32
    # o_ref: (C_out, tn) f32
    S = x_ref.shape[0]
    wt = w_ref[...]
    # Per-sample matmul (MXU, f32 accumulate) + running elementwise max (VPU).
    # S is small & static, so the Python loop fully unrolls at trace time.
    acc = jnp.dot(wt, x_ref[0], preferred_element_type=jnp.float32)
    for s in range(1, S):
        acc = jnp.maximum(acc, jnp.dot(wt, x_ref[s], preferred_element_type=jnp.float32))
    # bias + ReLU after the pool: max_s relu(y_s + b) == relu(max_s y_s + b)
    o_ref[...] = jnp.maximum(acc + b_ref[...], 0.0).astype(o_ref.dtype)


def _pick_tile(n_pad, S, Ck, Cout, budget_bytes=12 * 1024 * 1024):
    """Largest point-tile (multiple of 128) whose double-buffered blocks fit VMEM."""
    ck_p = ((Ck + 15) // 16) * 16          # bf16 sublane padding of the channel dim
    co_p = ((Cout + 7) // 8) * 8
    for t in (4096, 2048, 1024, 512, 256, 128):
        if n_pad % t:
            continue
        vmem = 2 * (S * ck_p * t * 2 + co_p * t * 4)   # in + out, double-buffered
        if vmem <= budget_bytes:
            return t
    return 128


def mlp_maxpool(xk, W, b, *, compute_dtype=jnp.bfloat16):
    """xk: (B, S, C_k, N)  ->  (B, C_out, N)
    y[b,o,n] = relu( max_s sum_c W[c,o] * xk[b,s,c,n]  +  b[o] )."""
    B, S, Ck, N = xk.shape
    Cout = W.shape[1]
    n_pad = ((N + 127) // 128) * 128       # lane-align the point axis
    if n_pad != N:
        xk = jnp.pad(xk, ((0, 0), (0, 0), (0, 0), (0, n_pad - N)))
    tn = _pick_tile(n_pad, S, Ck, Cout)

    out = pl.pallas_call(
        _mlp_pool_kernel,
        out_shape=jax.ShapeDtypeStruct((B, Cout, n_pad), jnp.float32),
        grid_spec=pltpu.PrefetchScalarGridSpec(
            num_scalar_prefetch=0,
            grid=(B, n_pad // tn),
            in_specs=[
                pl.BlockSpec((None, S, Ck, tn), lambda bi, ni: (bi, 0, 0, ni)),
                pl.BlockSpec((Cout, Ck), lambda bi, ni: (0, 0)),   # resident weights
                pl.BlockSpec((Cout, 1), lambda bi, ni: (0, 0)),    # resident bias
            ],
            out_specs=pl.BlockSpec((None, Cout, tn), lambda bi, ni: (bi, 0, ni)),
        ),
        compiler_params=pltpu.CompilerParams(
            dimension_semantics=("parallel", "parallel"),
            vmem_limit_bytes=32 * 1024 * 1024,
        ),
    )(xk.astype(compute_dtype),
      W.T.astype(compute_dtype),
      b.reshape(Cout, 1).astype(jnp.float32))

    if n_pad != N:
        out = out[:, :, :N]
    return out                                            # (B, C_out, N)


# ---------------------------------------------------------------------------
# JAX glue reproducing the PyTorch forward (slicing / alignment / concat)
# ---------------------------------------------------------------------------
def unitization(vec):
    # vec: (B, N, 3); matches torch: 2-norm over dim 2, + 1e-8, divide
    ln = jnp.sqrt(jnp.sum(vec * vec, axis=2, keepdims=True)) + 1e-8
    return vec / ln


class PointAlign:
    # TODO(synk): PointAlign source not provided; implemented as the canonical
    # per-point rotation into the orthonormal frame built from (normal, azimuth).
    def __init__(self, normal, azi_vec, nsample):
        z = unitization(normal)                                         # (B,N,3)
        a = azi_vec - jnp.sum(azi_vec * z, axis=2, keepdims=True) * z
        xax = unitization(a)
        yax = jnp.cross(z, xax)
        self.R = jnp.stack([xax, yax, z], axis=2)                       # (B,N,3,3)
        self.nsample = nsample

    def align_stacked(self, V):
        # V: (B, S, N, n_vec, 3) -> rotated, channel-major, point axis last:
        # (B, S, 3*n_vec, N) with channels ordered [vec0.xyz, vec1.xyz, ...]
        B, S, N, nv, _ = V.shape
        rot = jnp.einsum("bnij,bsnvj->bsvin", self.R, V)                # (B,S,nv,3,N)
        return rot.reshape(B, S, 3 * nv, N)


def conv_layer_forward(inp, normal, W, b, *, first_layer=False, last_layer=False):
    """
    inp: (B, 12 + C_in, npoint, nsample) for non-first layers
         channels: 0:3 abs coords | 3:6 normals | 6:9 rel coords | 9:12 dirs | 12: features
         (first layer: 0:3 abs | 3:6 normals | 6:9 rel | 9: features)
    normal: (B, npoint, 3)
    returns: (B, C_out, npoint) for last layer, else (B, 3 + C_out, npoint)
    self.mlp is modeled as a 1x1 Conv2d (W, b) + ReLU.
    # TODO(synk): if the original self.mlp contains BatchNorm, fold its scale/shift into W, b.
    """
    other_normal = inp[:, 3:6, :, :]
    delta_x = inp[:, 6:9, :, :]
    feats = inp[:, 9:, :, :] if first_layer else inp[:, 12:, :, :]

    azi_vec = jnp.transpose(jnp.mean(delta_x[:, :, :, 1:], axis=3), (0, 2, 1))    # (B,N,3)
    point_align = PointAlign(normal, azi_vec, inp.shape[3])

    # vector fields as (B, S, N, 3), rotated in one stacked einsum
    delta_v = jnp.transpose(delta_x, (0, 3, 2, 1))
    onorm_v = jnp.transpose(other_normal, (0, 3, 2, 1))
    if first_layer:
        V = jnp.stack([delta_v, onorm_v], axis=3)                       # (B,S,N,2,3)
    else:
        other_dir = inp[:, 9:12, :, :]
        azi_vec = unitization(azi_vec)
        dir_dif_v = azi_vec[:, None, :, :] - jnp.transpose(other_dir, (0, 3, 2, 1))
        V = jnp.stack([delta_v, onorm_v, dir_dif_v], axis=3)            # (B,S,N,3,3)

    rot = point_align.align_stacked(V)                                  # (B,S,3*nv,N)
    feats_t = jnp.transpose(feats, (0, 3, 1, 2))                        # (B,S,C_in,N)

    # MLP input, original channel order, already in kernel layout (B, S, C_k, N)
    if first_layer:
        xk = jnp.concatenate([rot[:, :, 0:3], feats_t, rot[:, :, 3:6]], axis=2)
    else:
        xk = jnp.concatenate(
            [rot[:, :, 0:3], feats_t, rot[:, :, 3:6], rot[:, :, 6:9]], axis=2)

    # hot path (self.mlp + F.max_pool2d((1, nsample)).squeeze(3)) in Pallas
    feat = mlp_maxpool(xk, W, b)                                        # (B, Cout, N)

    if not last_layer:
        azi_vec = unitization(azi_vec)
        feat = jnp.concatenate([jnp.transpose(azi_vec, (0, 2, 1)), feat], axis=1)
    return feat


# ---------------------------------------------------------------------------
if __name__ == "__main__":
    key = jax.random.PRNGKey(0)
    B, C_in, npoint, nsample = 2, 4, 16, 8
    C_mlp_in = (3 + C_in) + 3 + 3          # x + aligned normals + dir_difs (non-first layer)
    C_out = 32

    k1, k2, k3, k4 = jax.random.split(key, 4)
    inp = jax.random.normal(k1, (B, 12 + C_in, npoint, nsample), dtype=jnp.float32)
    normal = jax.random.normal(k2, (B, npoint, 3), dtype=jnp.float32)
    # deterministic synthetic MLP params (1x1 Conv2d(C_mlp_in, C_out) + ReLU)
    W = 0.1 * jax.random.normal(k3, (C_mlp_in, C_out), dtype=jnp.float32)
    bias = 0.01 * jax.random.normal(k4, (C_out,), dtype=jnp.float32)

    # --- correctness check of the Pallas hot path against a pure-JAX reference ---
    xk_test = jax.random.normal(k2, (B, nsample, C_mlp_in, npoint), dtype=jnp.float32)
    got = jax.block_until_ready(mlp_maxpool(xk_test, W, bias))
    ref = jax.nn.relu(
        jnp.max(jnp.einsum("bscn,co->bson", xk_test, W), axis=1) + bias[None, :, None])
    assert got.shape == ref.shape, (got.shape, ref.shape)
    assert jnp.allclose(got, ref, atol=3e-2, rtol=3e-2)    # bf16 inputs, f32 accumulation

    # --- full ConvLayer forward ---
    out = conv_layer_forward(inp, normal, W, bias, first_layer=False, last_layer=False)
    out = jax.block_until_ready(out)
    assert out.shape == (B, 3 + C_out, npoint), out.shape
    assert out.dtype == jnp.float32
    print("KERNEL_OK")
</pallas_src>

<mosaic_0001>
module attributes {stable_mosaic.version = 11 : i64} {
  func.func @_mlp_pool_kernel(%arg0: i32, %arg1: i32, %arg2: memref<1x8x13x128xbf16, #tpu.memory_space<vmem>>, %arg3: memref<32x13xbf16, #tpu.memory_space<vmem>>, %arg4: memref<32x1xf32, #tpu.memory_space<vmem>>, %arg5: memref<1x32x128xf32, #tpu.memory_space<vmem>>) attributes {dimension_semantics = [#tpu.dimension_semantics<parallel>, #tpu.dimension_semantics<parallel>], iteration_bounds = array<i64: 2, 1>, scalar_prefetch = 0 : i64, scratch_operands = 0 : i64, tpu.core_type = #tpu.core_type<tc>, window_params = [{transform_indices = @transform_0, window_bounds = array<i64: 1, 8, 13, 128>}, {pipeline_mode = #tpu.pipeline_mode<synchronous>, transform_indices = @transform_1, window_bounds = array<i64: 32, 13>}, {pipeline_mode = #tpu.pipeline_mode<synchronous>, transform_indices = @transform_2, window_bounds = array<i64: 32, 1>}, {transform_indices = @transform_3, window_bounds = array<i64: 1, 32, 128>}]} {
    %c0 = arith.constant 0 : index
    %c0_0 = arith.constant 0 : index
    %0 = vector.load %arg3[%c0, %c0_0] : memref<32x13xbf16, #tpu.memory_space<vmem>>, vector<32x13xbf16>
    %c0_1 = arith.constant 0 : index
    %c0_2 = arith.constant 0 : index
    %c0_3 = arith.constant 0 : index
    %c0_4 = arith.constant 0 : index
    %1 = vector.load %arg2[%c0_1, %c0_2, %c0_3, %c0_4] : memref<1x8x13x128xbf16, #tpu.memory_space<vmem>>, vector<1x1x13x128xbf16>
    %2 = vector.shape_cast %1 : vector<1x1x13x128xbf16> to vector<13x128xbf16>
    %cst = arith.constant dense<0.000000e+00> : vector<32x128xf32>
    %3 = tpu.matmul %0, %2, %cst {dimension_numbers = #tpu.dot_dimension_numbers<[1], [0], [0], [1], [0, 0, 1, 1], [], []>} : vector<32x13xbf16>, vector<13x128xbf16>, vector<32x128xf32> -> vector<32x128xf32>
    %c0_5 = arith.constant 0 : index
    %c1 = arith.constant 1 : index
    %c0_6 = arith.constant 0 : index
    %c0_7 = arith.constant 0 : index
    %4 = vector.load %arg2[%c0_5, %c1, %c0_6, %c0_7] : memref<1x8x13x128xbf16, #tpu.memory_space<vmem>>, vector<1x1x13x128xbf16>
    %5 = vector.shape_cast %4 : vector<1x1x13x128xbf16> to vector<13x128xbf16>
    %cst_8 = arith.constant dense<0.000000e+00> : vector<32x128xf32>
    %6 = tpu.matmul %0, %5, %cst_8 {dimension_numbers = #tpu.dot_dimension_numbers<[1], [0], [0], [1], [0, 0, 1, 1], [], []>} : vector<32x13xbf16>, vector<13x128xbf16>, vector<32x128xf32> -> vector<32x128xf32>
    %7 = arith.maximumf %3, %6 : vector<32x128xf32>
    %c0_9 = arith.constant 0 : index
    %c2 = arith.constant 2 : index
    %c0_10 = arith.constant 0 : index
    %c0_11 = arith.constant 0 : index
    %8 = vector.load %arg2[%c0_9, %c2, %c0_10, %c0_11] : memref<1x8x13x128xbf16, #tpu.memory_space<vmem>>, vector<1x1x13x128xbf16>
    %9 = vector.shape_cast %8 : vector<1x1x13x128xbf16> to vector<13x128xbf16>
    %cst_12 = arith.constant dense<0.000000e+00> : vector<32x128xf32>
    %10 = tpu.matmul %0, %9, %cst_12 {dimension_numbers = #tpu.dot_dimension_numbers<[1], [0], [0], [1], [0, 0, 1, 1], [], []>} : vector<32x13xbf16>, vector<13x128xbf16>, vector<32x128xf32> -> vector<32x128xf32>
    %11 = arith.maximumf %7, %10 : vector<32x128xf32>
    %c0_13 = arith.constant 0 : index
    %c3 = arith.constant 3 : index
    %c0_14 = arith.constant 0 : index
    %c0_15 = arith.constant 0 : index
    %12 = vector.load %arg2[%c0_13, %c3, %c0_14, %c0_15] : memref<1x8x13x128xbf16, #tpu.memory_space<vmem>>, vector<1x1x13x128xbf16>
    %13 = vector.shape_cast %12 : vector<1x1x13x128xbf16> to vector<13x128xbf16>
    %cst_16 = arith.constant dense<0.000000e+00> : vector<32x128xf32>
    %14 = tpu.matmul %0, %13, %cst_16 {dimension_numbers = #tpu.dot_dimension_numbers<[1], [0], [0], [1], [0, 0, 1, 1], [], []>} : vector<32x13xbf16>, vector<13x128xbf16>, vector<32x128xf32> -> vector<32x128xf32>
    %15 = arith.maximumf %11, %14 : vector<32x128xf32>
    %c0_17 = arith.constant 0 : index
    %c4 = arith.constant 4 : index
    %c0_18 = arith.constant 0 : index
    %c0_19 = arith.constant 0 : index
    %16 = vector.load %arg2[%c0_17, %c4, %c0_18, %c0_19] : memref<1x8x13x128xbf16, #tpu.memory_space<vmem>>, vector<1x1x13x128xbf16>
    %17 = vector.shape_cast %16 : vector<1x1x13x128xbf16> to vector<13x128xbf16>
    %cst_20 = arith.constant dense<0.000000e+00> : vector<32x128xf32>
    %18 = tpu.matmul %0, %17, %cst_20 {dimension_numbers = #tpu.dot_dimension_numbers<[1], [0], [0], [1], [0, 0, 1, 1], [], []>} : vector<32x13xbf16>, vector<13x128xbf16>, vector<32x128xf32> -> vector<32x128xf32>
    %19 = arith.maximumf %15, %18 : vector<32x128xf32>
    %c0_21 = arith.constant 0 : index
    %c5 = arith.constant 5 : index
    %c0_22 = arith.constant 0 : index
    %c0_23 = arith.constant 0 : index
    %20 = vector.load %arg2[%c0_21, %c5, %c0_22, %c0_23] : memref<1x8x13x128xbf16, #tpu.memory_space<vmem>>, vector<1x1x13x128xbf16>
    %21 = vector.shape_cast %20 : vector<1x1x13x128xbf16> to vector<13x128xbf16>
    %cst_24 = arith.constant dense<0.000000e+00> : vector<32x128xf32>
    %22 = tpu.matmul %0, %21, %cst_24 {dimension_numbers = #tpu.dot_dimension_numbers<[1], [0], [0], [1], [0, 0, 1, 1], [], []>} : vector<32x13xbf16>, vector<13x128xbf16>, vector<32x128xf32> -> vector<32x128xf32>
    %23 = arith.maximumf %19, %22 : vector<32x128xf32>
    %c0_25 = arith.constant 0 : index
    %c6 = arith.constant 6 : index
    %c0_26 = arith.constant 0 : index
    %c0_27 = arith.constant 0 : index
    %24 = vector.load %arg2[%c0_25, %c6, %c0_26, %c0_27] : memref<1x8x13x128xbf16, #tpu.memory_space<vmem>>, vector<1x1x13x128xbf16>
    %25 = vector.shape_cast %24 : vector<1x1x13x128xbf16> to vector<13x128xbf16>
    %cst_28 = arith.constant dense<0.000000e+00> : vector<32x128xf32>
    %26 = tpu.matmul %0, %25, %cst_28 {dimension_numbers = #tpu.dot_dimension_numbers<[1], [0], [0], [1], [0, 0, 1, 1], [], []>} : vector<32x13xbf16>, vector<13x128xbf16>, vector<32x128xf32> -> vector<32x128xf32>
    %27 = arith.maximumf %23, %26 : vector<32x128xf32>
    %c0_29 = arith.constant 0 : index
    %c7 = arith.constant 7 : index
    %c0_30 = arith.constant 0 : index
    %c0_31 = arith.constant 0 : index
    %28 = vector.load %arg2[%c0_29, %c7, %c0_30, %c0_31] : memref<1x8x13x128xbf16, #tpu.memory_space<vmem>>, vector<1x1x13x128xbf16>
    %29 = vector.shape_cast %28 : vector<1x1x13x128xbf16> to vector<13x128xbf16>
    %cst_32 = arith.constant dense<0.000000e+00> : vector<32x128xf32>
    %30 = tpu.matmul %0, %29, %cst_32 {dimension_numbers = #tpu.dot_dimension_numbers<[1], [0], [0], [1], [0, 0, 1, 1], [], []>} : vector<32x13xbf16>, vector<13x128xbf16>, vector<32x128xf32> -> vector<32x128xf32>
    %31 = arith.maximumf %27, %30 : vector<32x128xf32>
    %c0_33 = arith.constant 0 : index
    %c0_34 = arith.constant 0 : index
    %32 = vector.load %arg4[%c0_33, %c0_34] : memref<32x1xf32, #tpu.memory_space<vmem>>, vector<32x1xf32>
    %33 = vector.broadcast %32 : vector<32x1xf32> to vector<32x128xf32>
    %34 = arith.addf %31, %33 : vector<32x128xf32>
    %cst_35 = arith.constant 0.000000e+00 : f32
    %35 = vector.broadcast %cst_35 : f32 to vector<32x128xf32>
    %36 = arith.maximumf %34, %35 : vector<32x128xf32>
    %c0_36 = arith.constant 0 : index
    %c0_37 = arith.constant 0 : index
    %c0_38 = arith.constant 0 : index
    %37 = vector.load %arg5[%c0_36, %c0_37, %c0_38] : memref<1x32x128xf32, #tpu.memory_space<vmem>>, vector<1x32x128xf32>
    %38 = vector.shape_cast %37 : vector<1x32x128xf32> to vector<32x128xf32>
    %39 = vector.shape_cast %36 : vector<32x128xf32> to vector<1x32x128xf32>
    tpu.vector_store %arg5[%c0_36, %c0_37, %c0_38], %39 {strides = array<i32>} : memref<1x32x128xf32, #tpu.memory_space<vmem>>, vector<1x32x128xf32>,
    return
  }
  func.func @transform_0(%arg0: i32, %arg1: i32) -> (i32, i32, i32, i32) {
    %c0_i32 = arith.constant 0 : i32
    %c0_i32_0 = arith.constant 0 : i32
    %c0_i32_1 = arith.constant 0 : i32
    return %arg0, %c0_i32, %c0_i32_0, %arg1 : i32, i32, i32, i32
  }
  func.func @transform_1(%arg0: i32, %arg1: i32) -> (i32, i32) {
    %c0_i32 = arith.constant 0 : i32
    %c0_i32_0 = arith.constant 0 : i32
    %c0_i32_1 = arith.constant 0 : i32
    return %c0_i32, %c0_i32_0 : i32, i32
  }
  func.func @transform_2(%arg0: i32, %arg1: i32) -> (i32, i32) {
    %c0_i32 = arith.constant 0 : i32
    %c0_i32_0 = arith.constant 0 : i32
    %c0_i32_1 = arith.constant 0 : i32
    return %c0_i32, %c0_i32_0 : i32, i32
  }
  func.func @transform_3(%arg0: i32, %arg1: i32) -> (i32, i32, i32) {
    %c0_i32 = arith.constant 0 : i32
    %c0_i32_0 = arith.constant 0 : i32
    return %arg0, %c0_i32, %arg1 : i32, i32, i32
  }
}

</mosaic_0001>

<bundles_post_ra>
// kernel: tpu_custom_call.1
= control target key start
LH: loop header
LB: loop body
LE: loop exit
PB: predicated region body
PF: predicated region fallthrough
CT: control target
= control target key end

     0   :  { %8 = vsyncpa [#allocation3], 0  ;;  %s1038_s0 = inlined_call_operand.vmem [shape: bf16[2,8,13,128], index: 0, kind: input, shape index: {}]   ;;  %s1039_s1 = inlined_call_operand.vmem [shape: bf16[32,13], index: 1, kind: input, shape index: {}]   ;;  %s1040_s2 = inlined_call_operand.vmem [shape: f32[32,1], index: 2, kind: input, shape index: {}]   ;;  %s1041_s3 = inlined_call_operand.hbm [shape: f32[2,32,128], index: 3, kind: output, shape index: {}]  }
   0x1   :  { %10 = vsyncpa [#allocation3 + $0x1], 0  ;;  %s878_s12 = smov 0   ;;  %s880_s13 = smov 0  }
   0x2   :  { %s882_s14 = smov 0   ;;  %s884_s15 = smov 0  }
   0x3   :  { %s886_s16 = smov 0   ;;  %s888_s17 = smov 0  }
   0x4 LB: > { %s618_s18 = sadd.s32 4294967295, %s852_s17   ;;  %s619_s19 = sadd.s32 4294967294, %s852_s17   ;;  %s852_s17 = sphi %s888_s17, %s16_s17   ;;  %s848_s16 = sphi %s886_s16, %s1048_s16   ;;  %s844_s15 = sphi %s884_s15, %s1047_s15   ;;  %s840_s14 = sphi %s882_s14, %s1046_s14   ;;  %s836_s13 = sphi %s880_s13, %s1045_s13   ;;  %s832_s12 = sphi %s878_s12, %s1044_s12  }
   0x5   : > { %s28_s20 = sadd.s32 1, %s848_s16  ;;  %s107_s21 = sadd.s32 1, %s840_s14 }
   0x6   : > { %p30_p0 = scmp.ge.s32.totalorder %s28_s20, 2  ;;  %p117_p1 = scmp.ne.s32.totalorder %s840_s14, %s836_s13 }
   0x7   : > { %p118_p2 = scmp.eq.s32.totalorder %s618_s18, 1  ;;  %p123_p3 = scmp.ne.s32.totalorder %s836_s13, %s832_s12 }
   0x8   : > { %s1050_s20 = smov (%p30_p0, %s28_s20), 0  ;;  %p124_p5 = scmp.eq.s32.totalorder %s619_s19, 1 }
   0x9   : > { %p918_p4 = por %p118_p2, %p117_p1  ;;  %s102_s23 = ssub.s32 %s848_s16, %s1050_s20 }
   0xa   : > { %p622_p6 = scmp.ge.s32.totalorder %s852_s17, 1  ;;  %p105_p7 = scmp.eq.s32.totalorder %s102_s23, 0 }
   0xb   : > { %p925_p8 = por %p124_p5, %p123_p3  ;;  %p159_p9 = scmp.lt.s32.totalorder %s852_s17, 3 }
   0xc   : > { %s931_s25 = scalar_select %p105_p7, %s840_s14, %s107_s21  }
   0xd   : > { %p160_p10 = pnand %p622_p6, %p159_p9 }
   0xe   : > { %p186_p11 = scmp.lt.s32.totalorder (!%p160_p10), %s844_s15, 1  ;;  %s712_s29 = sshll.u32 (!%p160_p10), %s844_s15, 5 }
   0xf   : > { %163 = sbr.rel (%p160_p10) target bundleno = 233 (0xe9), region = 32  ;;  %s536_s5 = scalar_lea.hbm (!%p160_p10), %s1041_s3, %s712_s29 }
  0x10   : > { %s539_s7 = sshll.u32 (!%p160_p10), %s536_s5, 4  ;;  %s794_s18 = scalar_lea.hbm (!%p160_p10), %s1041_s3, 64  ;;  %s540_s7 = int_to_ptr.hbm [resolvable:$true] %s539_s7 }
  0x11   : > { %s788_s8 = sshra.s32 (!%p160_p10), %s540_s7, 4  ;;  %s789_s8 = int_to_ptr.hbm [resolvable:$true] %s788_s8 }
  0x12   : > { %s790_s9 = scalar_lea.hbm (!%p160_p10), %s789_s8, 32  ;;  %p795_p1 = scmp.lt.s32.totalorder (!%p160_p10), %s789_s8, %s1041_s3 }
  0x13   : > { %p791_p12 = scmp.ne.s32.totalorder (!%p160_p10), %s789_s8, %s790_s9  ;;  %p796_p2 = scmp.lt.s32.totalorder (!%p160_p10), %s794_s18, %s790_s9 }
  0x14   : > { %vm223_vm0 = vcmask 1045504   ;;  %s187_s26 = scalar_select %p186_p11, %s844_s15, 1  ;;  %vm224_vm1 = vcmask 1046528   ;;  %v854_v0 = vmov 65535   ;;  %v702_v14 = vld [vmem:[%s1039_s1] sm:$0xff]  ;;  %vm216_vm2 = vcmask 105472  }
  0x15   : > { %v225_v1 = vsel %vm223_vm0, 4294967295, %v854_v0  ;;  %v703_v36 = vld [vmem:[%s1039_s1 + $0x8] sm:$0xff]  ;;  %v487_v37 = vld [vmem:[%s1040_s2] sm:$0xff]  ;;  %v489_v38 = vld [vmem:[%s1040_s2 + $0x10] sm:$0xff]  ;;  %v855_v39 = vmov 0   ;;  %p792_p13 = pnand %p791_p12, %p918_p4  ;;  %p797_p3 = por %p796_p2, %p795_p1 }
  0x16   : > { %s701_s27 = sshll.u32 %s187_s26, 6  ;;  %v226_v2 = vsel %vm224_vm1, %v225_v1, 0  ;;  %772 = vset.pattern.permute.xlu0 %v855_v39  ;;  %773 = vset.pattern.permute.xlu1 %v855_v39  ;;  %v488_v40 = vld [vmem:[%s1040_s2 + $0x8] sm:$0xff]  ;;  %v490_v41 = vld [vmem:[%s1040_s2 + $0x18] sm:$0xff]  ;;  %s183_s26 = sand.u32 1, %s836_s13  }
  0x17   : > { %s938_s30 = scalar_lea.vmem %s1038_s0, %s701_s27  ;;  %493 = vperm.xlu0 %772, %v487_v37   ;;  %503 = vperm.xlu1 %773, %v489_v38   ;;  %s623_s27 = sshll.u32 %s183_s26, 5 }
  0x18   : > { %v636_v3 = vld [vmem:[%s938_s30] sm:$0xf]  ;;  %v704_v4 = vld [vmem:[%s938_s30] sm:$0x70]  ;;  %v644_v5 = vld [vmem:[%s938_s30 + $0x8] sm:$0xf]  ;;  %p793_p0 = pneg %p792_p13 }
  0x19   : > { %v637_v6 = vor.u32 %v704_v4, %v636_v3  ;;  %v705_v7 = vld [vmem:[%s938_s30 + $0x8] sm:$0x70]  ;;  %v652_v8 = vld [vmem:[%s938_s30 + $0x10] sm:$0xf]  ;;  %v706_v9 = vld [vmem:[%s938_s30 + $0x10] sm:$0x70] }
  0x1a   : > { %v645_v10 = vor.u32 %v705_v7, %v644_v5  ;;  %v653_v11 = vor.u32 %v706_v9, %v652_v8  ;;  %v660_v12 = vld [vmem:[%s938_s30 + $0x18] sm:$0xf]  ;;  %v707_v13 = vld [vmem:[%s938_s30 + $0x18] sm:$0x70]  ;;  %v684_v15 = vld [vmem:[%s938_s30 + $0x30] sm:$0xf]  ;;  %p798_p5 = pnand %p797_p3, %p793_p0 }
  0x1b   : > { %v228_v16 = vand.u32 %v637_v6, %v226_v2  ;;  %v661_v17 = vor.u32 %v707_v13, %v660_v12  ;;  %v710_v18 = vld [vmem:[%s938_s30 + $0x30] sm:$0x70]  ;;  %v668_v19 = vld [vmem:[%s938_s30 + $0x20] sm:$0xf]  ;;  %v708_v20 = vld [vmem:[%s938_s30 + $0x20] sm:$0x70] }
  0x1c   : > { %v258_v21 = vand.u32 %v645_v10, %v226_v2  ;;  %v292_v22 = vand.u32 %v653_v11, %v226_v2  ;;  %v685_v23 = vor.u32 %v710_v18, %v684_v15  ;;  %v669_v24 = vor.u32 %v708_v20, %v668_v19  ;;  %v692_v25 = vld [vmem:[%s938_s30 + $0x38] sm:$0xf]  ;;  %v711_v26 = vld [vmem:[%s938_s30 + $0x38] sm:$0x70]  ;;  %v676_v27 = vld [vmem:[%s938_s30 + $0x28] sm:$0xf] }
  0x1d   : > { %237 = vmatpush.bf16.msra.mxu0 %v228_v16  ;;  %v326_v28 = vand.u32 %v661_v17, %v226_v2  ;;  %v693_v29 = vor.u32 %v711_v26, %v692_v25  ;;  %v709_v30 = vld [vmem:[%s938_s30 + $0x28] sm:$0x70]  ;;  %s993_s28 = scalar_lea.vmem [#allocation2], %s623_s27  ;;  %s524_s15 = scalar_lea.sflag [#allocation3], %s183_s26 }
  0x1e   : > { %267 = vmatpush.bf16.msra.mxu1 %v258_v21  ;;  %301 = vmatpush.bf16.msra.mxu2 %v292_v22  ;;  %v428_v31 = vand.u32 %v685_v23, %v226_v2  ;;  %v360_v32 = vand.u32 %v669_v24, %v226_v2  ;;  %v677_v33 = vor.u32 %v709_v30, %v676_v27  ;;  %s537_s6 = sshll.u32 %s993_s28, 4  ;;  %s538_s6 = int_to_ptr.vmem [resolvable:$true] %s537_s6 }
  0x1f   : > { %335 = vmatpush.bf16.msra.mxu3 %v326_v28  ;;  %v462_v34 = vand.u32 %v693_v29, %v226_v2  ;;  %498 = vperm.xlu0 %772, %v488_v40  }
  0x20   : > { %638 = vmatmul.msk.bf16.vlgmr.msra.gmra.mxu0 %vm216_vm2, %v702_v14  ;;  %v394_v35 = vand.u32 %v677_v33, %v226_v2  ;;  %508 = vperm.xlu1 %773, %v490_v41  }
  0x21   : > { %646 = vmatmul.msk.bf16.vlgmr.msra.gmra.mxu1 %vm216_vm2, %v702_v14  ;;  %654 = vmatmul.msk.bf16.vlgmr.msra.gmra.mxu2 %vm216_vm2, %v702_v14 }
  0x22   : > { %437 = vmatpush.bf16.msrb.mxu2 %v428_v31  ;;  %662 = vmatmul.msk.bf16.vlgmr.msra.gmra.mxu3 %vm216_vm2, %v702_v14 }
  0x23   : > { %369 = vmatpush.bf16.msrb.mxu0 %v360_v32  ;;  %471 = vmatpush.bf16.msrb.mxu3 %v462_v34 }
  0x24   : > { %403 = vmatpush.bf16.msrb.mxu1 %v394_v35 }
  0x30   : > { %639 = vmatmul.msk.bf16.gmra.mxu0 %vm216_vm2, %v703_v36 }
  0x31   : > { %647 = vmatmul.msk.bf16.gmra.mxu1 %vm216_vm2, %v703_v36  ;;  %655 = vmatmul.msk.bf16.gmra.mxu2 %vm216_vm2, %v703_v36 }
  0x32   : > { %663 = vmatmul.msk.bf16.gmra.mxu3 %vm216_vm2, %v703_v36 }
  0x40   : > { %670 = vmatmul.msk.bf16.vlgmr.msrb.gmra.mxu0 %vm216_vm2, %v702_v14 }
  0x41   : > { %678 = vmatmul.msk.bf16.vlgmr.msrb.gmra.mxu1 %vm216_vm2, %v702_v14  ;;  %686 = vmatmul.msk.bf16.vlgmr.msrb.gmra.mxu2 %vm216_vm2, %v702_v14 }
  0x42   : > { %694 = vmatmul.msk.bf16.vlgmr.msrb.gmra.mxu3 %vm216_vm2, %v702_v14 }
  0x50   : > { %671 = vmatmul.msk.bf16.gmra.mxu0 %vm216_vm2, %v703_v36 }
  0x51   : > { %679 = vmatmul.msk.bf16.gmra.mxu1 %vm216_vm2, %v703_v36  ;;  %687 = vmatmul.msk.bf16.gmra.mxu2 %vm216_vm2, %v703_v36 }
  0x52   : > { %695 = vmatmul.msk.bf16.gmra.mxu3 %vm216_vm2, %v703_v36 }
  0x89   : > { %v494_v4 = vpop.permute.xlu0 %493  ;;  %v504_v36 = vpop.permute.xlu1 %503 }
  0x91   : > { %v499_v22 = vpop.permute.xlu0 %498 }
  0x9d   : > { %v239_v42 = vpop.f32.mrf.mxu0 }
  0x9e   : > { %v269_v43 = vpop.f32.mrf.mxu1 }
  0x9f   : > { %v279_v56 = vmax.f32 %v239_v42, %v269_v43 }
  0xa4   : > { %v303_v44 = vpop.f32.mrf.mxu2 }
  0xa5   : > { %v337_v45 = vpop.f32.mrf.mxu3  ;;  %v241_v46 = vpop.f32.mrf.mxu0  ;;  %v313_v57 = vmax.f32 %v279_v56, %v303_v44 }
  0xa6   : > { %v271_v47 = vpop.f32.mrf.mxu1 }
  0xa7   : > { %v347_v59 = vmax.f32 %v313_v57, %v337_v45  ;;  %v280_v63 = vmax.f32 %v241_v46, %v271_v47  ;;  %v509_v47 = vpop.permute.xlu1 %508 }
  0xac   : > { %v305_v48 = vpop.f32.mrf.mxu2 }
  0xad   : > { %v339_v49 = vpop.f32.mrf.mxu3  ;;  %v244_v50 = vpop.f32.mrf.mxu0  ;;  %v314_v1 = vmax.f32 %v280_v63, %v305_v48 }
  0xae   : > { %v274_v51 = vpop.f32.mrf.mxu1 }
  0xaf   : > { %v348_v5 = vmax.f32 %v314_v1, %v339_v49  ;;  %v281_v10 = vmax.f32 %v244_v50, %v274_v51 }
  0xb4   : > { %v308_v52 = vpop.f32.mrf.mxu2 }
  0xb5   : > { %v342_v53 = vpop.f32.mrf.mxu3  ;;  %v246_v54 = vpop.f32.mrf.mxu0  ;;  %v315_v13 = vmax.f32 %v281_v10, %v308_v52 }
  0xb6   : > { %v276_v55 = vpop.f32.mrf.mxu1 }
  0xb7   : > { %v349_v18 = vmax.f32 %v315_v13, %v342_v53  ;;  %v282_v23 = vmax.f32 %v246_v54, %v276_v55 }
  0xbc   : > { %v310_v58 = vpop.f32.mrf.mxu2 }
  0xbd   : > { %v344_v60 = vpop.f32.mrf.mxu3  ;;  %v371_v61 = vpop.f32.mrf.mxu0  ;;  %v316_v27 = vmax.f32 %v282_v23, %v310_v58 }
  0xbe   : > { %v405_v62 = vpop.f32.mrf.mxu1  ;;  %v381_v0 = vmax.f32 %v347_v59, %v371_v61 }
  0xbf   : > { %v350_v32 = vmax.f32 %v316_v27, %v344_v60 }
  0xc0   : > { %v415_v2 = vmax.f32 %v381_v0, %v405_v62 }
  0xc4   : > { %v439_v3 = vpop.f32.mrf.mxu2 }
  0xc5   : > { %v449_v6 = vmax.f32 %v415_v2, %v439_v3  ;;  %v473_v7 = vpop.f32.mrf.mxu3  ;;  %v373_v8 = vpop.f32.mrf.mxu0 }
  0xc6   : > { %v407_v9 = vpop.f32.mrf.mxu1  ;;  %v382_v12 = vmax.f32 %v348_v5, %v373_v8 }
  0xc7   : > { %v483_v11 = vmax.f32 %v449_v6, %v473_v7 }
  0xc8   : > { %v416_v15 = vmax.f32 %v382_v12, %v407_v9 }
  0xc9   : > { %v511_v14 = vadd.f32 %v494_v4, %v483_v11 }
  0xcb   : > { %v515_v16 = vmax.f32 %v511_v14, 0.0 }
  0xcc   : > { %v441_v17 = vpop.f32.mrf.mxu2 }
  0xcd   : > { %519 = vst [vmem:[%s993_s28] sm:$0xff] %v515_v16  ;;  %v450_v19 = vmax.f32 %v416_v15, %v441_v17  ;;  %v475_v20 = vpop.f32.mrf.mxu3  ;;  %v376_v21 = vpop.f32.mrf.mxu0 }
  0xce   : > { %v383_v25 = vmax.f32 %v349_v18, %v376_v21  ;;  %v410_v26 = vpop.f32.mrf.mxu1 }
  0xcf   : > { %v484_v24 = vmax.f32 %v450_v19, %v475_v20 }
  0xd0   : > { %v417_v29 = vmax.f32 %v383_v25, %v410_v26 }
  0xd1   : > { %v512_v28 = vadd.f32 %v499_v22, %v484_v24 }
  0xd3   : > { %v516_v30 = vmax.f32 %v512_v28, 0.0 }
  0xd4   : > { %v444_v31 = vpop.f32.mrf.mxu2 }
  0xd5   : > { %520 = vst [vmem:[%s993_s28 + $0x8] sm:$0xff] %v516_v30  ;;  %v451_v33 = vmax.f32 %v417_v29, %v444_v31  ;;  %v478_v34 = vpop.f32.mrf.mxu3  ;;  %v378_v35 = vpop.f32.mrf.mxu0 }
  0xd6   : > { %v384_v38 = vmax.f32 %v350_v32, %v378_v35  ;;  %v412_v40 = vpop.f32.mrf.mxu1 }
  0xd7   : > { %v485_v37 = vmax.f32 %v451_v33, %v478_v34 }
  0xd8   : > { %v418_v42 = vmax.f32 %v384_v38, %v412_v40 }
  0xd9   : > { %v513_v39 = vadd.f32 %v504_v36, %v485_v37 }
  0xdb   : > { %v517_v41 = vmax.f32 %v513_v39, 0.0 }
  0xdc   : > { %v446_v43 = vpop.f32.mrf.mxu2 }
  0xdd   : > { %521 = vst [vmem:[%s993_s28 + $0x10] sm:$0xff] %v517_v41  ;;  %v452_v44 = vmax.f32 %v418_v42, %v446_v43  ;;  %v480_v45 = vpop.f32.mrf.mxu3 }
  0xdf   : > { %v486_v46 = vmax.f32 %v452_v44, %v480_v45 }
  0xe1   : > { %v514_v48 = vadd.f32 %v509_v47, %v486_v46 }
  0xe3   : > { %v518_v49 = vmax.f32 %v514_v48, 0.0 }
  0xe5   : > { %522 = vst [vmem:[%s993_s28 + $0x18] sm:$0xff] %v518_v49 }
  0xe6   : > { %801 = shalt.err (!%p798_p5)
}
  0xe7   : > { %s856_s23 = smov 128   ;;  %s857_s26 = smov 8  }
  0xe8   : > { %713 = dma.vmem_to_hbm [thread:$0]  (%p918_p4), %s538_s6, 512, %s540_s7, %s524_s15, %s856_s23, %s856_s23, %s857_s26  }
  0xe9 PF: > { %p719_p6 = scmp.ge.s32.totalorder %s852_s17, 2  ;;  %s554_s27 = sand.u32 1, %s832_s12  }
  0xea   : > { %s555_s28 = scalar_lea.sflag [#allocation3], %s554_s27 }
  0xeb   : > { %p716_p7 = pnand %p719_p6, %p925_p8 }
  0xed   : > { %p717_p9 = pneg %p716_p7 }
  0xef   : > { %827 = dma.done.wait (%p717_p9), %s555_s28, 512  }
  0xf0   : > { %829 = vsyncadd (%p717_p9), %s555_s28, 4294966784  ;;  %s16_s17 = sadd.s32 1, %s852_s17   ;;  %s1044_s12 = smov %s836_s13 }
  0xf1   : > { %p13_p10 = scmp.ge.s32.totalorder %s16_s17, 4   ;;  %s1045_s13 = smov %s840_s14 }
  0xf2   : > { %s1046_s14 = smov %s931_s25  ;;  %s1047_s15 = smov %s848_s16 }
  0xf3   : > { %s1048_s16 = smov %s1050_s20  ;;  %15 = sbr.rel (!%p13_p10) target bundleno = 4 (0x4), region = 74 }
  0xf8   :  { %561 = vsyncpa [#allocation3], 1 }
  0xf9   :  { %563 = vsyncpa [#allocation3 + $0x1], 1 }

</bundles_post_ra>
